<compile_context>
chip_gen: v7x
topology: tpu7x:2x2x1
jax: 0.10.0
libtpu: 0.0.40
codegen_flags: <defaults>
</compile_context>

<pallas_src>
import jax
import jax.numpy as jnp
from jax import lax
from jax.experimental import pallas as pl
from jax.experimental.pallas import tpu as pltpu


_VMEM_LIMIT_BYTES = 64 * 1024 * 1024   # raised scoped-VMEM ceiling (safe on v5e/v6e/v7x)
_VMEM_BUDGET_BYTES = 48 * 1024 * 1024  # tile-sizing budget (headroom under the limit)


# ----------------------------------------------------------------------------
# Kernels
# ----------------------------------------------------------------------------

def _xw_kernel(x_ref, w_ref, d_ref, o_ref):
    """Feature transform with the column half of the normalization folded in:
         XW' = d^{-1/2}[:,None] * (X @ W)
    bf16 MXU operands, f32 accumulation + f32 epilogue, bf16 lane-dense store."""
    xw = jnp.dot(x_ref[...], w_ref[...], preferred_element_type=jnp.float32)
    o_ref[...] = (xw * d_ref[...]).astype(o_ref.dtype)


def _agg_fused_kernel(a_ref, d_ref, xw_ref, b1_ref, w2_ref, o_ref, acc_ref):
    """Layer-1 aggregation over a (row, contraction) grid, with the layer-2
    feature transform fused into the epilogue.

    a_ref  : (tm, tk)  raw 0/1 adjacency tile (bf16)
    d_ref  : (tm, 1)   d^{-1/2} for the tile rows (f32)
    xw_ref : (tk, Hp)  XW1' = d * (X @ W1) tile (bf16)
    b1_ref : (1,  Hp)  layer-1 bias (f32)
    w2_ref : (Hp, Cp)  layer-2 weights (bf16, grid-resident)
    o_ref  : (tm, Cp)  HW2' = d * (relu(d*(A@XW1') + b1) @ W2)  (bf16)
    acc_ref: (tm, Hp)  f32 accumulator scratch
    """
    k = pl.program_id(1)

    @pl.when(k == 0)
    def _():
        acc_ref[...] = jnp.zeros_like(acc_ref)

    acc_ref[...] += jnp.dot(a_ref[...], xw_ref[...],
                            preferred_element_type=jnp.float32)

    @pl.when(k == pl.num_programs(1) - 1)
    def _():
        h1 = jnp.maximum(acc_ref[...] * d_ref[...] + b1_ref[...], 0.0)     # f32 epilogue
        hw2 = jnp.dot(h1.astype(jnp.bfloat16), w2_ref[...],
                      preferred_element_type=jnp.float32)
        o_ref[...] = (hw2 * d_ref[...]).astype(o_ref.dtype)


def _agg_final_kernel(a_ref, d_ref, xw_ref, b_ref, o_ref, acc_ref):
    """Layer-2 aggregation:  out_tile = d_col * (A_tile @ HW2') + b2."""
    k = pl.program_id(1)

    @pl.when(k == 0)
    def _():
        acc_ref[...] = jnp.zeros_like(acc_ref)

    acc_ref[...] += jnp.dot(a_ref[...], xw_ref[...],
                            preferred_element_type=jnp.float32)

    @pl.when(k == pl.num_programs(1) - 1)
    def _():
        o_ref[...] = (acc_ref[...] * d_ref[...] + b_ref[...]).astype(o_ref.dtype)


# ----------------------------------------------------------------------------
# pallas_call wrappers
# ----------------------------------------------------------------------------

def _round_up(x, mult):
    return ((x + mult - 1) // mult) * mult


def _divisor_from(n, candidates):
    for c in candidates:
        if n % c == 0:
            return c
    return n


def _pick_tiles(n, hp, cp, budget=_VMEM_BUDGET_BYTES):
    """Pick (tm, tk) for the (rows, contraction)-tiled aggregation under a VMEM budget."""
    tk = _divisor_from(n, (512, 256, 128))                   # contraction (lane) tile
    tm = _divisor_from(n, (512, 256, 128, 64, 32, 16, 8))    # row tile

    def vmem_bytes(tm_, tk_):
        return (2 * tm_ * tk_ * 2      # A tile (bf16), double-buffered
                + 2 * tk_ * hp * 2     # XW tile (bf16), double-buffered
                + tm_ * hp * 4         # f32 accumulator scratch
                + 2 * tm_ * cp * 4     # output tile (worst case f32), double-buffered
                + 2 * hp * cp * 2)     # resident W2 (bf16)

    while tm > 8 and vmem_bytes(tm, tk) > budget:
        tm //= 2
    while tk > 128 and vmem_bytes(tm, tk) > budget:
        tk //= 2
    return tm, tk


def _feature_transform(x_bf, w_bf, d_col, *, tm):
    """XW' = d * (X @ W), row-tiled over nodes (parallel grid), W grid-resident."""
    n, f = x_bf.shape
    kp = w_bf.shape[1]
    return pl.pallas_call(
        _xw_kernel,
        out_shape=jax.ShapeDtypeStruct((n, kp), jnp.bfloat16),
        grid=(n // tm,),
        in_specs=[pl.BlockSpec((tm, f), lambda i: (i, 0)),
                  pl.BlockSpec((f, kp), lambda i: (0, 0)),
                  pl.BlockSpec((tm, 1), lambda i: (i, 0))],
        out_specs=pl.BlockSpec((tm, kp), lambda i: (i, 0)),
        compiler_params=pltpu.CompilerParams(
            dimension_semantics=("parallel",),
            vmem_limit_bytes=_VMEM_LIMIT_BYTES),
    )(x_bf, w_bf, d_col)


def _aggregate_fused(adj_bf, d_col, xw1, b1p, w2p_bf, *, tm, tk):
    """HW2' = d * (relu(d * (A @ XW1') + b1) @ W2), (rows x contraction) grid."""
    n = adj_bf.shape[0]
    hp = xw1.shape[1]
    cp = w2p_bf.shape[1]
    return pl.pallas_call(
        _agg_fused_kernel,
        out_shape=jax.ShapeDtypeStruct((n, cp), jnp.bfloat16),
        grid=(n // tm, n // tk),
        in_specs=[
            pl.BlockSpec((tm, tk), lambda i, k: (i, k)),   # raw 0/1 adjacency (bf16)
            pl.BlockSpec((tm, 1), lambda i, k: (i, 0)),    # d^{-1/2} for tile rows
            pl.BlockSpec((tk, hp), lambda i, k: (k, 0)),   # XW1' tile (bf16)
            pl.BlockSpec((1, hp), lambda i, k: (0, 0)),    # b1
            pl.BlockSpec((hp, cp), lambda i, k: (0, 0)),   # W2 (bf16, resident)
        ],
        out_specs=pl.BlockSpec((tm, cp), lambda i, k: (i, 0)),
        scratch_shapes=[pltpu.VMEM((tm, hp), jnp.float32)],
        compiler_params=pltpu.CompilerParams(
            dimension_semantics=("parallel", "arbitrary"),
            vmem_limit_bytes=_VMEM_LIMIT_BYTES),
    )(adj_bf, d_col, xw1, b1p, w2p_bf)


def _aggregate_final(adj_bf, d_col, hw2, b2p, *, tm, tk):
    """out = d * (A @ HW2') + b2, (rows x contraction) grid, f32 output."""
    n = adj_bf.shape[0]
    cp = hw2.shape[1]
    return pl.pallas_call(
        _agg_final_kernel,
        out_shape=jax.ShapeDtypeStruct((n, cp), jnp.float32),
        grid=(n // tm, n // tk),
        in_specs=[
            pl.BlockSpec((tm, tk), lambda i, k: (i, k)),
            pl.BlockSpec((tm, 1), lambda i, k: (i, 0)),
            pl.BlockSpec((tk, cp), lambda i, k: (k, 0)),
            pl.BlockSpec((1, cp), lambda i, k: (0, 0)),
        ],
        out_specs=pl.BlockSpec((tm, cp), lambda i, k: (i, 0)),
        scratch_shapes=[pltpu.VMEM((tm, cp), jnp.float32)],
        compiler_params=pltpu.CompilerParams(
            dimension_semantics=("parallel", "arbitrary"),
            vmem_limit_bytes=_VMEM_LIMIT_BYTES),
    )(adj_bf, d_col, hw2, b2p)


def gcn_forward(adj, x, w1, b1, w2, b2, *, tm=None, tk=None):
    """Two-layer GCN forward. adj: (N,N) raw 0/1 adjacency (with self loops),
    x: (N,F), w1: (F,H), b1: (H,)/(1,H), w2: (H,C), b2: (C,)/(1,C)."""
    n, f = x.shape
    h = w1.shape[1]
    c = w2.shape[1]
    assert adj.shape == (n, n)

    hp = _round_up(h, 128)
    cp = _round_up(c, 128)

    if tm is None or tk is None:
        auto_tm, auto_tk = _pick_tiles(n, hp, cp)
        tm = auto_tm if tm is None else tm
        tk = auto_tk if tk is None else tk
    assert n % tm == 0 and n % tk == 0 and tm % 8 == 0, \
        "row/contraction tiles must divide N; row tile must be a multiple of 8"

    # Lane-pad parameter widths to multiples of 128 so every kernel store is an
    # unmasked `vst` (padded columns stay exactly zero through both layers).
    w1p = jnp.zeros((f, hp), jnp.float32).at[:, :h].set(w1).astype(jnp.bfloat16)
    b1p = jnp.zeros((1, hp), jnp.float32).at[:, :h].set(jnp.reshape(b1, (1, h)))
    w2p = jnp.zeros((hp, cp), jnp.float32).at[:h, :c].set(w2).astype(jnp.bfloat16)
    b2p = jnp.zeros((1, cp), jnp.float32).at[:, :c].set(jnp.reshape(b2, (1, c)))

    # Symmetric-normalization vector d = deg^{-1/2} (matches DGL norm='both' for
    # undirected graphs; zero-degree nodes output just the bias).
    deg = jnp.sum(adj, axis=1)
    d = jnp.where(deg > 0, lax.rsqrt(deg), 0.0).astype(jnp.float32)
    d_col = d[:, None]

    # Stream the raw 0/1 adjacency as bf16 (lossless) — halves the dominant HBM read.
    adj_bf = adj.astype(jnp.bfloat16)
    x_bf = x.astype(jnp.bfloat16)

    # Layer 1 feature transform with d folded in:   XW1' = d * (X @ W1)     (N,Hp) bf16
    xw1 = _feature_transform(x_bf, w1p, d_col, tm=tm)
    # Layer 1 aggregation + fused layer-2 feature transform:
    #   HW2' = d * (relu(d * (A @ XW1') + b1) @ W2)                         (N,Cp) bf16
    hw2 = _aggregate_fused(adj_bf, d_col, xw1, b1p, w2p, tm=tm, tk=tk)
    # Layer 2 aggregation:   out = d * (A @ HW2') + b2                      (N,Cp) f32
    outp = _aggregate_final(adj_bf, d_col, hw2, b2p, tm=tm, tk=tk)

    return outp[:, :c]


# ----------------------------------------------------------------------------
# Demo / self-check
# ----------------------------------------------------------------------------

if __name__ == "__main__":
    key = jax.random.PRNGKey(0)
    N, IN_FEATS, HIDDEN, NUM_CLASSES = 256, 32, 64, 8
    TM, TK = 128, 128  # 2x2 grid -> exercises parallel rows + contraction accumulation

    k_adj, k_x, k_w1, k_b1, k_w2, k_b2 = jax.random.split(key, 6)

    # Deterministic synthetic graph: random symmetric adjacency + self loops.
    rand = jax.random.uniform(k_adj, (N, N))
    adj = (rand + rand.T > 1.5).astype(jnp.float32)
    adj = jnp.maximum(adj, jnp.eye(N, dtype=jnp.float32))

    x = jax.random.normal(k_x, (N, IN_FEATS), dtype=jnp.float32)
    w1 = jax.random.normal(k_w1, (IN_FEATS, HIDDEN), dtype=jnp.float32) * (1.0 / jnp.sqrt(IN_FEATS))
    b1 = jax.random.normal(k_b1, (1, HIDDEN), dtype=jnp.float32) * 0.01
    w2 = jax.random.normal(k_w2, (HIDDEN, NUM_CLASSES), dtype=jnp.float32) * (1.0 / jnp.sqrt(HIDDEN))
    b2 = jax.random.normal(k_b2, (1, NUM_CLASSES), dtype=jnp.float32) * 0.01

    out = gcn_forward(adj, x, w1, b1, w2, b2, tm=TM, tk=TK)
    out = jax.block_until_ready(out)
    assert out.shape == (N, NUM_CLASSES)

    # Reference that mimics the kernel arithmetic exactly (bf16 MXU operands, f32
    # accumulation / epilogues, d folded into the feature transforms) -> tight tol.
    bf16, f32 = jnp.bfloat16, jnp.float32
    deg = jnp.sum(adj, axis=1)
    d = jnp.where(deg > 0, lax.rsqrt(deg), 0.0)
    a_bf = adj.astype(bf16)
    xw1_r = (jnp.dot(x.astype(bf16), w1.astype(bf16), preferred_element_type=f32)
             * d[:, None]).astype(bf16)
    h1_r = jnp.maximum(jnp.dot(a_bf, xw1_r, preferred_element_type=f32) * d[:, None] + b1, 0.0)
    hw2_r = (jnp.dot(h1_r.astype(bf16), w2.astype(bf16), preferred_element_type=f32)
             * d[:, None]).astype(bf16)
    out_mimic = jnp.dot(a_bf, hw2_r, preferred_element_type=f32) * d[:, None] + b2
    assert jnp.allclose(out, out_mimic, atol=1e-3, rtol=1e-3), "mismatch vs bf16-mimic reference"

    # Loose sanity check against the pure-f32 module semantics.
    a_hat = adj * d[:, None] * d[None, :]
    h1_f = jnp.maximum(a_hat @ (x @ w1) + b1, 0.0)
    out_f = a_hat @ (h1_f @ w2) + b2
    assert jnp.allclose(out, out_f, atol=2e-2, rtol=2e-2), "mismatch vs f32 reference"

    print("KERNEL_OK")
</pallas_src>

<mosaic_0001>
module attributes {stable_mosaic.version = 11 : i64} {
  func.func @_xw_kernel(%arg0: i32, %arg1: memref<128x32xbf16, #tpu.memory_space<vmem>>, %arg2: memref<32x128xbf16, #tpu.memory_space<vmem>>, %arg3: memref<128x1xf32, #tpu.memory_space<vmem>>, %arg4: memref<128x128xbf16, #tpu.memory_space<vmem>>) attributes {dimension_semantics = [#tpu.dimension_semantics<parallel>], iteration_bounds = array<i64: 2>, scalar_prefetch = 0 : i64, scratch_operands = 0 : i64, tpu.core_type = #tpu.core_type<tc>, window_params = [{transform_indices = @transform_0, window_bounds = array<i64: 128, 32>}, {pipeline_mode = #tpu.pipeline_mode<synchronous>, transform_indices = @transform_1, window_bounds = array<i64: 32, 128>}, {transform_indices = @transform_2, window_bounds = array<i64: 128, 1>}, {transform_indices = @transform_3, window_bounds = array<i64: 128, 128>}]} {
    %c0 = arith.constant 0 : index
    %c0_0 = arith.constant 0 : index
    %0 = vector.load %arg1[%c0, %c0_0] : memref<128x32xbf16, #tpu.memory_space<vmem>>, vector<128x32xbf16>
    %c0_1 = arith.constant 0 : index
    %c0_2 = arith.constant 0 : index
    %1 = vector.load %arg2[%c0_1, %c0_2] : memref<32x128xbf16, #tpu.memory_space<vmem>>, vector<32x128xbf16>
    %cst = arith.constant dense<0.000000e+00> : vector<128x128xf32>
    %2 = tpu.matmul %0, %1, %cst {dimension_numbers = #tpu.dot_dimension_numbers<[1], [0], [0], [1], [0, 0, 1, 1], [], []>} : vector<128x32xbf16>, vector<32x128xbf16>, vector<128x128xf32> -> vector<128x128xf32>
    %c0_3 = arith.constant 0 : index
    %c0_4 = arith.constant 0 : index
    %3 = vector.load %arg3[%c0_3, %c0_4] : memref<128x1xf32, #tpu.memory_space<vmem>>, vector<128x1xf32>
    %4 = vector.broadcast %3 : vector<128x1xf32> to vector<128x128xf32>
    %5 = arith.mulf %2, %4 : vector<128x128xf32>
    %6 = arith.truncf %5 : vector<128x128xf32> to vector<128x128xbf16>
    %c0_5 = arith.constant 0 : index
    %c0_6 = arith.constant 0 : index
    %7 = vector.load %arg4[%c0_5, %c0_6] : memref<128x128xbf16, #tpu.memory_space<vmem>>, vector<128x128xbf16>
    tpu.vector_store %arg4[%c0_5, %c0_6], %6 {strides = array<i32>} : memref<128x128xbf16, #tpu.memory_space<vmem>>, vector<128x128xbf16>,
    return
  }
  func.func @transform_0(%arg0: i32) -> (i32, i32) {
    %c0_i32 = arith.constant 0 : i32
    %c0_i32_0 = arith.constant 0 : i32
    return %arg0, %c0_i32 : i32, i32
  }
  func.func @transform_1(%arg0: i32) -> (i32, i32) {
    %c0_i32 = arith.constant 0 : i32
    %c0_i32_0 = arith.constant 0 : i32
    %c0_i32_1 = arith.constant 0 : i32
    return %c0_i32, %c0_i32_0 : i32, i32
  }
  func.func @transform_2(%arg0: i32) -> (i32, i32) {
    %c0_i32 = arith.constant 0 : i32
    %c0_i32_0 = arith.constant 0 : i32
    return %arg0, %c0_i32 : i32, i32
  }
  func.func @transform_3(%arg0: i32) -> (i32, i32) {
    %c0_i32 = arith.constant 0 : i32
    %c0_i32_0 = arith.constant 0 : i32
    return %arg0, %c0_i32 : i32, i32
  }
}

</mosaic_0001>

<bundles_post_ra>
// kernel: tpu_custom_call.1
= control target key start
LH: loop header
LB: loop body
LE: loop exit
PB: predicated region body
PF: predicated region fallthrough
CT: control target
= control target key end

     0   :  { %8 = vsyncpa [#allocation3], 0  ;;  %s1481_s0 = inlined_call_operand.hbm [shape: bf16[256,32], index: 0, kind: input, shape index: {}]   ;;  %s1482_s1 = inlined_call_operand.hbm [shape: bf16[32,128], index: 1, kind: input, shape index: {}]   ;;  %s1483_s2 = inlined_call_operand.hbm [shape: f32[256,1], index: 2, kind: input, shape index: {}]   ;;  %s1484_s3 = inlined_call_operand.hbm [shape: bf16[256,128], index: 3, kind: output, shape index: {}]  }
   0x1   :  { %10 = vsyncpa [#allocation3 + $0x1], 0 }
   0x2   :  { %11 = vsyncpa [#allocation6], 0 }
   0x3   :  { %12 = vsyncpa [#allocation4], 0 }
   0x4   :  { %14 = vsyncpa [#allocation4 + $0x1], 0  ;;  %s1178_s12 = smov 0   ;;  %s1180_s13 = smov 0  }
   0x5   :  { %s1182_s14 = smov 0   ;;  %s1184_s15 = smov 0  }
   0x6 LB: > { %s1199_s16 = sadd.s32 1, %s1145_s15   ;;  %s27_s17 = sadd.s32 1, %s1141_s14  ;;  %s1145_s15 = sphi %s1184_s15, %s1509_s15   ;;  %s1141_s14 = sphi %s1182_s14, %s1508_s14   ;;  %s1137_s13 = sphi %s1180_s13, %s1507_s13   ;;  %s1133_s12 = sphi %s1178_s12, %s1506_s12  }
   0x7   : > { %s24_s18 = ssub.s32 %s1145_s15, %s1199_s16  ;;  %p34_p0 = scmp.ne.s32.totalorder %s1141_s14, %s1137_s13 }
   0x8   : > { %p25_p1 = scmp.eq.s32.totalorder %s24_s18, 0  ;;  %p35_p2 = scmp.eq.s32.totalorder %s1145_s15, 0 }
   0x9   : > { %p928_p5 = scmp.lt.s32.totalorder %s1145_s15, 2  ;;  %s150_s20 = sand.u32 1, %s1145_s15  }
   0xa   : > { %s1208_s19 = scalar_select %p25_p1, %s1141_s14, %s27_s17  }
   0xb   : > { %p36_p3 = por %p35_p2, %p34_p0  ;;  %s152_s21 = sand.u32 1, %s1141_s14  }
   0xc   : > { %s752_s22 = sshll.u32 %s152_s21, 6  ;;  %s802_s23 = sshll.u32 %s1145_s15, 10 }
   0xd   : > { %s1221_s26 = scalar_lea.hbm %s1481_s0, %s802_s23  ;;  %s154_s27 = scalar_lea.vmem [#allocation2], %s752_s22 }
   0xe   : > { %s161_s28 = sshll.u32 %s154_s27, 4  ;;  %p1223_p6 = pnand %p928_p5, %p36_p3  ;;  %s1227_s28 = int_to_ptr.vmem [resolvable:$true] %s161_s28 }
   0xf   : > { %s1229_s30 = sshll.u32 %s152_s21, 7  ;;  %s1231_s4 = scalar_lea.sflag [#allocation3], %s150_s20 }
  0x10   : > { %s983_s5 = scalar_lea.hbm %s1221_s26, 1024  ;;  %p985_p8 = pneg %p1223_p6 }
  0x11   : > { %p984_p7 = scmp.ne.s32.totalorder %s1221_s26, %s983_s5  ;;  %s988_s8 = scalar_lea.hbm %s1481_s0, 2048 }
  0x12   : > { %p989_p11 = scmp.lt.u32.totalorder %s1221_s26, %s1481_s0  ;;  %p990_p12 = scmp.lt.u32.totalorder %s988_s8, %s983_s5 }
  0x13   : > { %p986_p9 = pnand %p985_p8, %p984_p7  ;;  %p992_p1 = scmp.lt.u32.totalorder %s983_s5, %s1221_s26 }
  0x14   : > { %p991_p13 = por %p990_p12, %p989_p11 }
  0x15   : > { %p987_p10 = pneg %p986_p9 }
  0x16   : > { %p993_p2 = por %p992_p1, %p991_p13 }
  0x18   : > { %p994_p3 = pnand %p993_p2, %p987_p10 }
  0x1a   : > { %997 = shalt.err (!%p994_p3)
}
  0x1b   : > { %s998_s11 = scalar_lea.vmem %s1227_s28, 1024  ;;  %s1147_s17 = smov [#allocation2]  }
  0x1c   : > { %p999_p5 = scmp.ne.s32.totalorder %s1227_s28, %s998_s11  ;;  %s1003_s18 = sshll.u32 %s1147_s17, 4  ;;  %s1004_s18 = int_to_ptr.vmem [resolvable:$false] %s1003_s18 }
  0x1d   : > { %s1005_s20 = scalar_lea.vmem %s1004_s18, 2048  ;;  %p1006_p4 = scmp.lt.s32.totalorder %s1227_s28, %s1004_s18 }
  0x1e   : > { %p1001_p7 = pnand %p999_p5, %p985_p8  ;;  %p1007_p11 = scmp.lt.s32.totalorder %s1005_s20, %s998_s11 }
  0x20   : > { %p1002_p9 = pneg %p1001_p7  ;;  %p1008_p12 = por %p1007_p11, %p1006_p4 }
  0x22   : > { %p1009_p13 = pnand %p1008_p12, %p1002_p9 }
  0x24   : > { %1012 = shalt.err (!%p1009_p13)
}
  0x25   : > { %s1489_s21 = smov 64   ;;  %s1490_s22 = smov 4  }
  0x26   : > { %919 = dma.hbm_to_vmem [thread:$0]  (!%p1223_p6), %s1221_s26, 1024, %s1227_s28, %s1231_s4, %s1489_s21, %s1489_s21, %s1490_s22  }
  0x27   : > { %s175_s23 = scalar_lea.vmem [#allocation7], %s1229_s30  ;;  %s1264_s25 = sadd.s32 4294967295, %s1145_s15  }
  0x28   : > { %s182_s24 = sshll.u32 %s175_s23, 4  ;;  %s748_s27 = sadd.s32 4294967294, %s1145_s15   ;;  %s1304_s24 = int_to_ptr.vmem [resolvable:$true] %s182_s24 }
  0x29   : > { %p40_p4 = scmp.ne.s32.totalorder %s1137_s13, %s1133_s12  ;;  %p1485_p10 = scmp.eq.s32.totalorder %s1264_s25, 0 }
  0x2a   : > { %p111_p1 = scmp.eq.s32.totalorder %s1264_s25, 1  ;;  %p117_p2 = scmp.eq.s32.totalorder %s748_s27, 1 }
  0x2b   : > { %p749_p3 = scmp.ge.s32.totalorder %s1145_s15, 1  ;;  %p1274_p5 = por %p1485_p10, %p40_p4 }
  0x2c   : > { %p1281_p7 = por %p111_p1, %p34_p0  ;;  %p1285_p9 = por %p117_p2, %p40_p4 }
  0x2d   : > { %s1492_s5 = scalar_select %p1274_p5, 1, 0 }
  0x2e   : > { %s1493_s26 = scalar_select %p1281_p7, 1, 0 }
  0x2f   : > { %s1494_s28 = scalar_select %p1285_p9, 1, 0 }
  0x30   : > { %p124_p11 = scmp.lt.s32.totalorder %s1145_s15, 3  ;;  %s1150_s6 = smov [#allocation5]  }
  0x31   : > { %s136_s7 = sshll.u32 %s1150_s6, 4  ;;  %s803_s8 = sshll.u32 %s1145_s15, 11  ;;  %s1294_s7 = int_to_ptr.vmem [resolvable:$true] %s136_s7 }
  0x32   : > { %p1290_p12 = pnand %p749_p3, %p124_p11  ;;  %s1302_s11 = scalar_lea.hbm %s1483_s2, %s803_s8 }
  0x33   : > { %s1013_s18 = scalar_lea.hbm %s1302_s11, 2048  ;;  %s1018_s27 = scalar_lea.hbm %s1483_s2, 4096 }
  0x34   : > { %s1495_s30 = scalar_select %p1290_p12, 1, 0 }
  0x35   : > { %p912_p0 = pneg %p1290_p12  ;;  %p1014_p4 = scmp.ne.s32.totalorder %s1302_s11, %s1013_s18 }
  0x36   : > { %p1019_p3 = scmp.lt.u32.totalorder %s1302_s11, %s1483_s2  ;;  %p1020_p11 = scmp.lt.u32.totalorder %s1018_s27, %s1013_s18 }
  0x37   : > { %p1308_p13 = pnand %p912_p0, %p1485_p10  ;;  %p1016_p1 = pnand %p1014_p4, %p985_p8 }
  0x38   : > { %p1021_p9 = por %p1020_p11, %p1019_p3  ;;  %p1022_p0 = scmp.lt.u32.totalorder %s1013_s18, %s1302_s11 }
  0x39   : > { %p1017_p2 = pneg %p1016_p1 }
  0x3a   : > { %p1023_p10 = por %p1022_p0, %p1021_p9 }
  0x3c   : > { %p1024_p7 = pnand %p1023_p10, %p1017_p2 }
  0x3e   : > { %1027 = shalt.err (!%p1024_p7)
}
  0x3f   : > { %s1028_s9 = scalar_lea.vmem %s1304_s24, 2048  ;;  %s1151_s10 = smov [#allocation7]  }
  0x40   : > { %p1029_p4 = scmp.ne.s32.totalorder %s1304_s24, %s1028_s9  ;;  %s1033_s20 = sshll.u32 %s1151_s10, 4  ;;  %s1034_s20 = int_to_ptr.vmem [resolvable:$false] %s1033_s20 }
  0x41   : > { %s1035_s23 = scalar_lea.vmem %s1034_s20, 4096  ;;  %p1036_p12 = scmp.lt.s32.totalorder %s1304_s24, %s1034_s20 }
  0x42   : > { %p1031_p1 = pnand %p1029_p4, %p985_p8  ;;  %p1037_p3 = scmp.lt.s32.totalorder %s1035_s23, %s1028_s9 }
  0x44   : > { %p1032_p5 = pneg %p1031_p1  ;;  %p1038_p11 = por %p1037_p3, %p1036_p12 }
  0x46   : > { %p1039_p9 = pnand %p1038_p11, %p1032_p5 }
  0x48   : > { %1042 = shalt.err (!%p1039_p9)
}
  0x49   : > { %s1152_s18 = smov 128   ;;  %s1153_s27 = smov 8  }
  0x4a   : > { %922 = dma.hbm_to_vmem [thread:$0]  (!%p1223_p6), %s1302_s11, 2048, %s1304_s24, %s1231_s4, %s1152_s18, %s1152_s18, %s1153_s27  }
  0x4b   : > { %s1043_s10 = scalar_lea.hbm %s1482_s1, 256  ;;  %p1045_p10 = pneg %p1308_p13 }
  0x4c   : > { %p1044_p8 = scmp.ne.s32.totalorder %s1482_s1, %s1043_s10  ;;  %p1050_p12 = scmp.lt.u32.totalorder %s1043_s10, %s1482_s1 }
  0x4e   : > { %p1046_p5 = pnand %p1045_p10, %p1044_p8 }
  0x50   : > { %p1047_p7 = pneg %p1046_p5 }
  0x52   : > { %p1052_p2 = pnand %p1050_p12, %p1047_p7 }
  0x54   : > { %1055 = shalt.err (!%p1052_p2)
}
  0x55   : > { %s1056_s29 = scalar_lea.vmem %s1294_s7, 256  ;;  %p1064_p1 = scmp.lt.s32.totalorder %s1294_s7, %s1294_s7 }
  0x56   : > { %p1057_p6 = scmp.ne.s32.totalorder %s1294_s7, %s1056_s29  ;;  %p1065_p3 = scmp.lt.s32.totalorder %s1056_s29, %s1056_s29 }
  0x58   : > { %p1059_p0 = pnand %p1057_p6, %p1045_p10  ;;  %p1066_p11 = por %p1065_p3, %p1064_p1 }
  0x5a   : > { %p1060_p4 = pneg %p1059_p0 }
  0x5c   : > { %p1067_p9 = pnand %p1066_p11, %p1060_p4 }
  0x5e   : > { %1070 = shalt.err (!%p1067_p9)
}
  0x5f   : > { %s1497_s4 = smov 4   ;;  %s1498_s21 = smov 64  }
  0x60   : > { %915 = dma.hbm_to_vmem [thread:$0]  (!%p1308_p13), %s1482_s1, 256, %s1294_s7, [#allocation6], %s1498_s21, %s1498_s21, %s1497_s4  }
  0x61   : > { %p1499_p8 = scmp.ne.s32.totalorder %s1495_s30, 0 }
  0x62   : > { %s196_s11 = sand.u32 (!%p1499_p8), 1, %s1264_s25   ;;  %s1364_s23 = sand.u32 (!%p1499_p8), 1, %s1137_s13  }
  0x63   : > { %194 = sbr.rel (%p1499_p8) target bundleno = 365 (0x16d), region = 32  ;;  %s759_s17 = sshll.u32 (!%p1499_p8), %s1364_s23, 6 }
  0x64   : > { %s197_s18 = scalar_lea.sflag (!%p1499_p8), [#allocation3], %s196_s11  ;;  %s1369_s27 = scalar_lea.vmem (!%p1499_p8), [#allocation2], %s759_s17 }
  0x65   : > { %p1500_p10 = scmp.ne.s32.totalorder (!%p1499_p8), %s1492_s5, 0 }
  0x6a   : > { %1116 = dma.done.wait (%p1500_p10), %s197_s18, 1024  }
  0x6b   : > { %1118 = vsyncadd (%p1500_p10), %s197_s18, 4294966272  ;;  %p1501_p13 = scmp.eq.s32.totalorder %s1264_s25, 0 }
  0x6d   : > { %1120 = dma.done.wait (%p1501_p13), [#allocation6], 256   ;;  %p1502_p5 = pmov %p1501_p13 }
  0x6e   : > { %s761_s30 = sshll.u32 %s1364_s23, 7 }
  0x6f   : > { %1122 = vsyncadd (%p1502_p5), [#allocation6], 4294967040  ;;  %s1380_s7 = scalar_lea.vmem [#allocation7], %s761_s30 }
  0x70   : > { %1124 = dma.done.wait (%p1500_p10), %s197_s18, 2048  }
  0x71   : > { %1126 = vsyncadd (%p1500_p10), %s197_s18, 4294965248  ;;  %v1154_v0 = vmov 0   ;;  %v973_v1 = vld [vmem:[#allocation5] sm:$0xff]   ;;  %v974_v2 = vld [vmem:[#allocation5 + $0x8] sm:$0xff]   ;;  %vm317_vm0 = vcmask 261120   ;;  %s1420_s5 = scalar_lea.vmem [#allocation8], %s759_s17 }
  0x72   : > { %972 = vset.pattern.permute.xlu1 %v1154_v0  ;;  %971 = vset.pattern.permute.xlu0 %v1154_v0  ;;  %v975_v3 = vld [vmem:[%s1369_s27] sm:$0xff]   ;;  %v977_v5 = vld [vmem:[%s1369_s27 + $0x8] sm:$0xff]   ;;  %v979_v7 = vld [vmem:[%s1369_s27 + $0x10] sm:$0xff]   ;;  %s645_s6 = sshll.u32 %s1420_s5, 4  ;;  %s820_s8 = sshll.u32 %s1264_s25, 10  ;;  %s1428_s6 = int_to_ptr.vmem [resolvable:$true] %s645_s6 }
  0x73   : > { %878 = vmatprep.subr.bf16.mxu0 %v973_v1  ;;  %898 = vmatprep.subr.bf16.mxu1 %v973_v1  ;;  %v976_v4 = vld [vmem:[%s1369_s27 + $0x20] sm:$0xff]   ;;  %v978_v6 = vld [vmem:[%s1369_s27 + $0x28] sm:$0xff]   ;;  %v980_v8 = vld [vmem:[%s1369_s27 + $0x30] sm:$0xff]   ;;  %s1433_s9 = scalar_lea.hbm %s1484_s3, %s820_s8  ;;  %s632_s20 = scalar_lea.sflag [#allocation4], %s1364_s23 }
  0x74   : > { %879 = vmatpush3.bf16.msra.mxu0 %v973_v1  ;;  %900 = vmatpush3.bf16.msra.mxu1 %v973_v1  ;;  %v441_v9 = vld [vmem:[%s1380_s7 + $0x10] sm:$0xff]  ;;  %v439_v10 = vld [vmem:[%s1380_s7] sm:$0xff]  ;;  %v442_v11 = vld [vmem:[%s1380_s7 + $0x18] sm:$0xff]  ;;  %s1071_s29 = scalar_lea.vmem %s1428_s6, 1024  ;;  %p1503_p12 = scmp.ne.s32.totalorder %s1493_s26, 0 }
  0x75   : > { %880 = vmatprep.subr.bf16.mxu0 %v974_v2  ;;  %899 = vmatprep.subr.bf16.mxu1 %v974_v2  ;;  %v440_v12 = vld [vmem:[%s1380_s7 + $0x8] sm:$0xff]  ;;  %v443_v16 = vld [vmem:[%s1380_s7 + $0x20] sm:$0xff]  ;;  %v446_v17 = vld [vmem:[%s1380_s7 + $0x38] sm:$0xff]  ;;  %p1072_p7 = scmp.ne.s32.totalorder %s1428_s6, %s1071_s29  ;;  %s1155_s4 = smov [#allocation8]  }
  0x76   : > { %882 = vmatprep.mubr.msk.bf16.mxu0 %vm317_vm0, %v975_v3  ;;  %890 = vmatprep.mubr.msk.bf16.mxu1 %vm317_vm0, %v976_v4  ;;  %v981_v13 = vld [vmem:[%s1369_s27 + $0x18] sm:$0xff]   ;;  %v445_v18 = vld [vmem:[%s1380_s7 + $0x30] sm:$0xff]  ;;  %v447_v20 = vld [vmem:[%s1380_s7 + $0x40] sm:$0xff]  ;;  %s1075_s21 = sshll.u32 %s1155_s4, 4  ;;  %s1076_s21 = int_to_ptr.vmem [resolvable:$false] %s1075_s21 }
  0x77   : > { %467 = vperm.xlu1 %972, %v441_v9   ;;  %457 = vperm.xlu0 %971, %v439_v10   ;;  %v982_v14 = vld [vmem:[%s1369_s27 + $0x38] sm:$0xff]   ;;  %v450_v21 = vld [vmem:[%s1380_s7 + $0x58] sm:$0xff]  ;;  %v449_v22 = vld [vmem:[%s1380_s7 + $0x50] sm:$0xff]  ;;  %p1073_p2 = pnand %p1072_p7, %p1503_p12  ;;  %s1077_s22 = scalar_lea.vmem %s1076_s21, 2048 }
  0x78   : > { %881 = vmatpush3.bf16.msra.mxu0 %v974_v2  ;;  %901 = vmatpush3.bf16.msra.mxu1 %v974_v2  ;;  %v444_v15 = vld [vmem:[%s1380_s7 + $0x28] sm:$0xff]  ;;  %v451_v24 = vld [vmem:[%s1380_s7 + $0x60] sm:$0xff]  ;;  %v454_v25 = vld [vmem:[%s1380_s7 + $0x78] sm:$0xff]  ;;  %p1078_p0 = scmp.lt.s32.totalorder %s1428_s6, %s1076_s21  ;;  %p1079_p4 = scmp.lt.s32.totalorder %s1077_s22, %s1071_s29 }
  0x79   : > { %v448_v19 = vld [vmem:[%s1380_s7 + $0x48] sm:$0xff]  ;;  %v453_v26 = vld [vmem:[%s1380_s7 + $0x70] sm:$0xff]  ;;  %p1074_p6 = pneg %p1073_p2 }
  0x7a   : > { %v452_v23 = vld [vmem:[%s1380_s7 + $0x68] sm:$0xff]  ;;  %p1080_p1 = por %p1079_p4, %p1078_p0 }
  0x7b   : > { %883 = vmatmul.mubr.msk.bf16.vlgmr.msra.gmra.mrb[0].mxu0 %vm317_vm0, %v977_v5  ;;  %891 = vmatmul.mubr.msk.bf16.vlgmr.msra.gmra.mrb[0].mxu1 %vm317_vm0, %v978_v6 }
  0x7c   : > { %886 = vmatprep.mubr.msk.bf16.mxu0 %vm317_vm0, %v979_v7  ;;  %894 = vmatprep.mubr.msk.bf16.mxu1 %vm317_vm0, %v980_v8  ;;  %p1081_p3 = pnand %p1080_p1, %p1074_p6 }
  0x7d   : > { %472 = vperm.xlu1 %972, %v442_v11   ;;  %462 = vperm.xlu0 %971, %v440_v12  }
  0x81   : > { %482 = vperm.xlu1 %972, %v444_v15   ;;  %477 = vperm.xlu0 %971, %v443_v16  }
  0x83   : > { %887 = vmatmul.mubr.msk.bf16.gmra.mrb[4].mxu0 %vm317_vm0, %v981_v13  ;;  %895 = vmatmul.mubr.msk.bf16.gmra.mrb[4].mxu1 %vm317_vm0, %v982_v14 }
  0x85   : > { %492 = vperm.xlu1 %972, %v446_v17   ;;  %487 = vperm.xlu0 %971, %v445_v18  }
  0x89   : > { %502 = vperm.xlu1 %972, %v448_v19   ;;  %497 = vperm.xlu0 %971, %v447_v20  }
  0x8d   : > { %512 = vperm.xlu1 %972, %v450_v21   ;;  %507 = vperm.xlu0 %971, %v449_v22  }
  0x91   : > { %522 = vperm.xlu1 %972, %v452_v23   ;;  %517 = vperm.xlu0 %971, %v451_v24  }
  0x95   : > { %532 = vperm.xlu1 %972, %v454_v25   ;;  %527 = vperm.xlu0 %971, %v453_v26  }
  0xf6   : > { %v468_v27 = vpop.permute.xlu1 %467  ;;  %v458_v28 = vpop.permute.xlu0 %457 }
  0xfc   : > { %v473_v29 = vpop.permute.xlu1 %472  ;;  %v463_v30 = vpop.permute.xlu0 %462 }
 0x100   : > { %v483_v31 = vpop.permute.xlu1 %482  ;;  %v478_v32 = vpop.permute.xlu0 %477 }
 0x104   : > { %v493_v33 = vpop.permute.xlu1 %492  ;;  %v488_v34 = vpop.permute.xlu0 %487 }
 0x108   : > { %v503_v35 = vpop.permute.xlu1 %502  ;;  %v498_v36 = vpop.permute.xlu0 %497 }
 0x10c   : > { %v513_v37 = vpop.permute.xlu1 %512  ;;  %v508_v38 = vpop.permute.xlu0 %507 }
 0x110   : > { %v523_v39 = vpop.permute.xlu1 %522  ;;  %v518_v40 = vpop.permute.xlu0 %517 }
 0x114   : > { %v533_v61 = vpop.permute.xlu1 %532  ;;  %v528_v62 = vpop.permute.xlu0 %527 }
 0x14e   : > { %v884_v41 = vpop.f32.mrb[0].mxu0  ;;  %v892_v42 = vpop.f32.mrb[0].mxu1 }
 0x14f   : > { %v376_v43 = vpop.f32.mrb[1].mxu0  ;;  %v408_v44 = vpop.f32.mrb[1].mxu1  ;;  %v537_v47 = vmul.f32 %v884_v41, %v468_v27  ;;  %v545_v48 = vmul.f32 %v892_v42, %v508_v38 }
 0x150   : > { %v885_v45 = vpop.f32.mrb[2].mxu0  ;;  %v893_v46 = vpop.f32.mrb[2].mxu1  ;;  %v535_v53 = vmul.f32 %v458_v28, %v376_v43  ;;  %v543_v54 = vmul.f32 %v498_v36, %v408_v44 }
 0x151   : > { %v538_v49 = vmul.f32 %v885_v45, %v473_v29  ;;  %v546_v50 = vmul.f32 %v893_v46, %v513_v37  ;;  %v379_v51 = vpop.f32.mrb[3].mxu0  ;;  %v411_v52 = vpop.f32.mrb[3].mxu1 }
 0x152   : > { %v536_v55 = vmul.f32 %v463_v30, %v379_v51  ;;  %v544_v56 = vmul.f32 %v503_v35, %v411_v52 }
 0x153   : > { %v829_v57 = vpack.c.bf16 %v538_v49, %v537_v47  ;;  %v849_v58 = vpack.c.bf16 %v546_v50, %v545_v48 }
 0x154   : > { %v824_v59 = vpack.c.bf16 %v536_v55, %v535_v53  ;;  %v844_v60 = vpack.c.bf16 %v544_v56, %v543_v54 }
 0x155   : > { %861 = vst [vmem:[%s1420_s5 + $0x8] sm:$0xff] %v829_v57   ;;  %865 = vst [vmem:[%s1420_s5 + $0x28] sm:$0xff] %v849_v58  }
 0x156   : > { %825 = vst [vmem:[%s1420_s5] sm:$0xff] %v824_v59   ;;  %864 = vst [vmem:[%s1420_s5 + $0x20] sm:$0xff] %v844_v60   ;;  %v888_v63 = vpop.f32.mrb[4].mxu0  ;;  %v896_v0 = vpop.f32.mrb[4].mxu1 }
 0x157   : > { %v392_v1 = vpop.f32.mrb[5].mxu0  ;;  %v424_v2 = vpop.f32.mrb[5].mxu1  ;;  %v541_v5 = vmul.f32 %v888_v63, %v488_v34  ;;  %v549_v6 = vmul.f32 %v896_v0, %v528_v62 }
 0x158   : > { %v889_v3 = vpop.f32.mrb[6].mxu0  ;;  %v897_v4 = vpop.f32.mrb[6].mxu1  ;;  %v539_v11 = vmul.f32 %v478_v32, %v392_v1  ;;  %v547_v12 = vmul.f32 %v518_v40, %v424_v2 }
 0x159   : > { %v542_v7 = vmul.f32 %v889_v3, %v493_v33  ;;  %v550_v8 = vmul.f32 %v897_v4, %v533_v61  ;;  %v395_v9 = vpop.f32.mrb[7].mxu0  ;;  %v427_v10 = vpop.f32.mrb[7].mxu1 }
 0x15a   : > { %v540_v13 = vmul.f32 %v483_v31, %v395_v9  ;;  %v548_v14 = vmul.f32 %v523_v39, %v427_v10 }
 0x15b   : > { %v839_v15 = vpack.c.bf16 %v542_v7, %v541_v5  ;;  %v859_v16 = vpack.c.bf16 %v550_v8, %v549_v6 }
 0x15c   : > { %v834_v17 = vpack.c.bf16 %v540_v13, %v539_v11  ;;  %v854_v18 = vpack.c.bf16 %v548_v14, %v547_v12 }
 0x15d   : > { %863 = vst [vmem:[%s1420_s5 + $0x18] sm:$0xff] %v839_v15   ;;  %867 = vst [vmem:[%s1420_s5 + $0x38] sm:$0xff] %v859_v16  }
 0x15e   : > { %862 = vst [vmem:[%s1420_s5 + $0x10] sm:$0xff] %v834_v17   ;;  %866 = vst [vmem:[%s1420_s5 + $0x30] sm:$0xff] %v854_v18  }
 0x15f   : > { %1084 = shalt.err (!%p1081_p3)
}
 0x160   : > { %s1085_s24 = scalar_lea.hbm %s1433_s9, 1024  ;;  %s1089_s18 = scalar_lea.hbm %s1484_s3, 2048 }
 0x161   : > { %p1086_p11 = scmp.ne.s32.totalorder %s1433_s9, %s1085_s24  ;;  %p1090_p10 = scmp.lt.u32.totalorder %s1433_s9, %s1484_s3 }
 0x162   : > { %p1091_p13 = scmp.lt.u32.totalorder %s1089_s18, %s1085_s24  ;;  %p1093_p7 = scmp.lt.u32.totalorder %s1085_s24, %s1433_s9 }
 0x163   : > { %p1087_p9 = pnand %p1086_p11, %p1503_p12 }
 0x164   : > { %p1092_p5 = por %p1091_p13, %p1090_p10 }
 0x165   : > { %p1088_p8 = pneg %p1087_p9 }
 0x166   : > { %p1094_p2 = por %p1093_p7, %p1092_p5 }
 0x168   : > { %p1095_p6 = pnand %p1094_p2, %p1088_p8 }
 0x16a   : > { %1098 = shalt.err (!%p1095_p6)
}
 0x16b   : > { %s1156_s7 = smov 64   ;;  %s1157_s5 = smov 4  }
 0x16c   : > { %910 = dma.vmem_to_hbm [thread:$0]  (%p1503_p12), %s1428_s6, 1024, %s1433_s9, %s632_s20, %s1156_s7, %s1156_s7, %s1157_s5  }
 0x16d PF: > { %s660_s8 = sand.u32 1, %s1133_s12   ;;  %p1504_p0 = scmp.ne.s32.totalorder %s1494_s28, 0 }
 0x16e   : > { %p1505_p4 = scmp.ge.s32.totalorder %s1145_s15, 2  ;;  %s661_s25 = scalar_lea.sflag [#allocation4], %s660_s8 }
 0x170   : > { %p924_p1 = pnand %p1505_p4, %p1504_p0 }
 0x172   : > { %1128 = dma.done.wait (!%p924_p1), %s661_s25, 1024  }
 0x173   : > { %1130 = vsyncadd (!%p924_p1), %s661_s25, 4294966272  ;;  %p17_p3 = scmp.ge.s32.totalorder %s1199_s16, 4   ;;  %s1506_s12 = smov %s1137_s13 }
 0x174   : > { %s1507_s13 = smov %s1141_s14  ;;  %s1508_s14 = smov %s1208_s19 }
 0x175   : > { %s1509_s15 = smov %s1199_s16  ;;  %19 = sbr.rel (!%p17_p3) target bundleno = 6 (0x6), region = 92 }
 0x17c   :  { %666 = vsyncpa [#allocation3], 1 }
 0x17d   :  { %668 = vsyncpa [#allocation3 + $0x1], 1 }
 0x17e   :  { %669 = vsyncpa [#allocation6], 1 }
 0x17f   :  { %670 = vsyncpa [#allocation4], 1 }
 0x180   :  { %672 = vsyncpa [#allocation4 + $0x1], 1 }

</bundles_post_ra>
